<compile_context>
chip_gen: v5e
topology: v5e:2x2
jax: 0.10.0
libtpu: 0.0.40
codegen_flags: <defaults>
</compile_context>

<pallas_src>
import functools

import jax
import jax.numpy as jnp
import numpy as np
from jax import lax
from jax.experimental import pallas as pl
from jax.experimental.pallas import tpu as pltpu


def _dist_loss_kernel(s_ref, t_ref, stats_ref, inter_ref, *,
                      tau, eps, batch, num_classes, tile_b, tiles_per_core,
                      needs_mask):
    j = pl.program_id(1)

    # -------- init this core's accumulators on its first tile.
    @pl.when(j == 0)
    def _():
        stats_ref[...] = jnp.zeros_like(stats_ref)
        inter_ref[...] = jnp.zeros_like(inter_ref)

    ones_col = jnp.ones((num_classes, 1), jnp.float32)
    ones_row = jnp.ones((1, tile_b), jnp.float32)
    inv_c = 1.0 / num_classes

    if needs_mask:
        c = pl.program_id(0)
        # UN-clamped global row offset (the index_map clamps the DMA, the
        # masking must use the true offset so duplicated tiles contribute 0).
        start = (c * tiles_per_core + j) * tile_b
        row_ids = lax.broadcasted_iota(jnp.int32, (tile_b, 1), 0)
        valid = row_ids < (batch - start)
    else:
        valid = None

    def centered_softmax(ref):
        x = ref[...].astype(jnp.float32)
        if tau != 1.0:                       # static skip when tau == 1
            x = x * (1.0 / tau)
        x = x - jnp.max(x, axis=1, keepdims=True)          # row max: XLU
        ex = jnp.exp(x)                                    # EUP
        # Row-sum on the (otherwise idle) MXU instead of a cross-lane jnp.sum.
        denom = jnp.dot(ex, ones_col, preferred_element_type=jnp.float32)
        # Exact reciprocal: the 1/C centering relies on rows summing to ~1.
        y = ex * pl.reciprocal(denom, approx=False) - inv_c
        if valid is not None:
            y = jnp.where(valid, y, 0.0)
        return y

    def col_sum(x):   # (1, C): per-class sum over this tile's rows (MXU GEMV)
        return jnp.dot(ones_row, x, preferred_element_type=jnp.float32)

    def row_sum(x):   # (tile_b, 1): per-row sum over classes (MXU GEMV)
        return jnp.dot(x, ones_col, preferred_element_type=jnp.float32)

    # Finish the student side (softmax + its column sum) before the teacher
    # side to keep live ranges short.  (Stacked single-update of stats_ref is a
    # minor further win but the five row-slice RMWs are kept for robustness.)
    y_s = centered_softmax(s_ref)
    stats_ref[0:1, :] += col_sum(y_s)
    y_t = centered_softmax(t_ref)
    stats_ref[1:2, :] += col_sum(y_t)

    # One product at a time: product -> row-sum -> col-sum, then it dies.
    p = y_s * y_s
    ss = row_sum(p)
    stats_ref[2:3, :] += col_sum(p)
    p = y_t * y_t
    tt = row_sum(p)
    stats_ref[3:4, :] += col_sum(p)
    p = y_s * y_t
    st = row_sum(p)
    stats_ref[4:5, :] += col_sum(p)

    # -------- inter: per-row Pearson over classes.  Rows of (softmax - 1/C)
    # are (numerically) centered, so st/ss/tt are already the centered moments.
    r = st * lax.rsqrt(jnp.maximum(ss * tt, eps * eps))        # (tile_b, 1)
    if valid is not None:
        r = jnp.where(valid, r, 0.0)
    inter_ref[...] += jnp.dot(ones_row, r, preferred_element_type=jnp.float32)


def _vmem_capacity_bytes():
    try:
        v = int(pltpu.get_tpu_info().vmem_capacity_bytes)
        if v > 0:
            return v
    except Exception:
        pass
    return 64 * 1024 * 1024   # conservative fallback: v7x per-TensorCore VMEM


def _pick_tile_b(batch, num_classes, in_itemsize, vmem_phys_bytes):
    """Batch tile sized from the *total* per-step footprint:
    2 inputs x 2 pipeline buffers (input dtype) + ~8 live f32 intermediates."""
    per_row = num_classes * (4 * max(int(in_itemsize), 1) + 4 * 8)
    budget = int(0.45 * vmem_phys_bytes)
    tile_b = max(budget // max(per_row, 1), 16)   # floor 16 rows even for huge C
    tile_b = min(tile_b, batch, 4096)
    if tile_b < batch:
        tile_b = max(16, (tile_b // 16) * 16)     # sublane-aligned (f32 & bf16)
        tile_b = min(tile_b, batch)
    return int(tile_b)


def dist_loss(student_logits, teacher_logits, *, beta=1.0, gamma=1.0,
              tau=1.0, eps=1e-8, tile_b=None, num_cores=2):
    """Pallas implementation of DISTLoss.forward on [B, C] logits.
    (bf16 logits are accepted and promoted to f32 inside the kernel, halving
    HBM traffic vs. pre-casting — preferred on v5e where the kernel is
    bandwidth-bound.)"""
    assert student_logits.shape == teacher_logits.shape
    assert student_logits.ndim == 2
    B, C = student_logits.shape

    itemsize = max(jnp.dtype(student_logits.dtype).itemsize,
                   jnp.dtype(teacher_logits.dtype).itemsize)
    vmem_phys = _vmem_capacity_bytes()
    if tile_b is None:
        tile_b = _pick_tile_b(B, C, itemsize, vmem_phys)
    tile_b = min(int(tile_b), B)

    n_tiles = pl.cdiv(B, tile_b)
    num_cores = max(1, min(int(num_cores), n_tiles))
    tiles_per_core = pl.cdiv(n_tiles, num_cores)
    # Masking is only emitted if the padded grid does not cover B exactly.
    needs_mask = (num_cores * tiles_per_core * tile_b) != B

    def in_map(c, j):
        # Clamp so padded grid steps re-read the last real tile (their
        # contribution is masked to zero inside the kernel).
        return (jnp.minimum(c * tiles_per_core + j, n_tiles - 1), 0)

    kernel = functools.partial(
        _dist_loss_kernel, tau=float(tau), eps=float(eps), batch=B,
        num_classes=C, tile_b=tile_b, tiles_per_core=tiles_per_core,
        needs_mask=needs_mask)

    vmem_limit = int(min(0.9 * vmem_phys, 100 * 1024 * 1024))

    stats, inter = pl.pallas_call(
        kernel,
        out_shape=(jax.ShapeDtypeStruct((num_cores, 5, C), jnp.float32),
                   jax.ShapeDtypeStruct((num_cores, 1, 1), jnp.float32)),
        grid=(num_cores, tiles_per_core),
        in_specs=[
            pl.BlockSpec((tile_b, C), in_map),
            pl.BlockSpec((tile_b, C), in_map),
        ],
        out_specs=(
            pl.BlockSpec((None, 5, C), lambda c, j: (c, 0, 0)),   # per-core moments
            pl.BlockSpec((None, 1, 1), lambda c, j: (c, 0, 0)),   # per-core inter sum
        ),
        compiler_params=pltpu.CompilerParams(
            dimension_semantics=("parallel", "arbitrary"),
            vmem_limit_bytes=vmem_limit),
    )(student_logits, teacher_logits)

    # -------- tiny O(C) combine + finalize across cores in plain JAX.
    stats = jnp.sum(stats, axis=0)                     # (5, C) f32
    inter_sum = jnp.sum(inter)                         # scalar
    s1s, s1t, s2s, s2t, sst = (stats[0], stats[1], stats[2], stats[3], stats[4])
    inv_b = 1.0 / B
    cov = sst - s1s * s1t * inv_b
    var_s = s2s - s1s * s1s * inv_b
    var_t = s2t - s1t * s1t * inv_b
    col_pearson = cov * lax.rsqrt(jnp.maximum(var_s * var_t, float(eps) ** 2))
    intra = 1.0 - jnp.mean(col_pearson)
    inter_loss = 1.0 - inter_sum * inv_b
    return (float(tau) ** 2) * (float(beta) * inter_loss + float(gamma) * intra)


def _dist_loss_ref(student_logits, teacher_logits, *, beta=1.0, gamma=1.0,
                   tau=1.0, eps=1e-8):
    """Pure-JAX reference mirroring the PyTorch module."""
    y_s = jax.nn.softmax(student_logits.astype(jnp.float32) / tau, axis=1)
    y_t = jax.nn.softmax(teacher_logits.astype(jnp.float32) / tau, axis=1)

    def pearson_mean(a, b, axis):
        a_c = a - jnp.mean(a, axis=axis, keepdims=True)
        b_c = b - jnp.mean(b, axis=axis, keepdims=True)
        dot = jnp.sum(a_c * b_c, axis=axis)
        denom = jnp.sqrt(jnp.maximum(
            jnp.sum(a_c * a_c, axis=axis) * jnp.sum(b_c * b_c, axis=axis),
            eps * eps))
        return jnp.mean(dot / denom)

    inter = 1.0 - pearson_mean(y_s, y_t, 1)
    intra = 1.0 - pearson_mean(y_s, y_t, 0)
    return (tau ** 2) * (beta * inter + gamma * intra)


if __name__ == "__main__":
    eps = 1e-8
    key = jax.random.PRNGKey(0)

    # Case 1: f32 logits, batch divides the tile evenly -> no masking emitted,
    # 2-way "parallel" core split with a 2-step "arbitrary" reduction per core.
    B, C = 64, 128
    k_s, k_t = jax.random.split(key)
    s1 = jax.random.normal(k_s, (B, C), dtype=jnp.float32)
    t1 = jax.random.normal(k_t, (B, C), dtype=jnp.float32)
    out1 = dist_loss(s1, t1, beta=1.0, gamma=1.0, tau=1.0, eps=eps, tile_b=16)
    out1 = jax.block_until_ready(out1)
    ref1 = _dist_loss_ref(s1, t1, beta=1.0, gamma=1.0, tau=1.0, eps=eps)
    np.testing.assert_allclose(np.asarray(out1), np.asarray(ref1),
                               rtol=1e-5, atol=1e-6)

    # Case 2: bf16 logits, ragged batch (masking + clamped/padded tiles across
    # the two cores), tau != 1 and non-default beta/gamma.
    B2, C2 = 50, 128
    k_s2, k_t2 = jax.random.split(jax.random.fold_in(key, 1))
    s2 = jax.random.normal(k_s2, (B2, C2), dtype=jnp.float32).astype(jnp.bfloat16)
    t2 = jax.random.normal(k_t2, (B2, C2), dtype=jnp.float32).astype(jnp.bfloat16)
    out2 = dist_loss(s2, t2, beta=0.5, gamma=2.0, tau=2.0, eps=eps, tile_b=16)
    out2 = jax.block_until_ready(out2)
    ref2 = _dist_loss_ref(s2, t2, beta=0.5, gamma=2.0, tau=2.0, eps=eps)
    np.testing.assert_allclose(np.asarray(out2), np.asarray(ref2),
                               rtol=1e-5, atol=1e-6)

    # Case 3: automatic (VMEM-derived) tile size -> single full-batch tile,
    # single core, exercises the default sizing path.
    B3, C3 = 8, 256
    k_s3, k_t3 = jax.random.split(jax.random.fold_in(key, 2))
    s3 = jax.random.normal(k_s3, (B3, C3), dtype=jnp.float32)
    t3 = jax.random.normal(k_t3, (B3, C3), dtype=jnp.float32)
    out3 = dist_loss(s3, t3, beta=1.0, gamma=1.0, tau=1.0, eps=eps)
    out3 = jax.block_until_ready(out3)
    ref3 = _dist_loss_ref(s3, t3, beta=1.0, gamma=1.0, tau=1.0, eps=eps)
    np.testing.assert_allclose(np.asarray(out3), np.asarray(ref3),
                               rtol=1e-5, atol=1e-6)

    print("KERNEL_OK")
</pallas_src>

<mosaic_0001>
module attributes {stable_mosaic.version = 11 : i64} {
  func.func @_dist_loss_kernel(%arg0: i32, %arg1: i32, %arg2: memref<16x128xf32, #tpu.memory_space<vmem>>, %arg3: memref<16x128xf32, #tpu.memory_space<vmem>>, %arg4: memref<1x5x128xf32, #tpu.memory_space<vmem>>, %arg5: memref<1x1x1xf32, #tpu.memory_space<vmem>>) attributes {dimension_semantics = [#tpu.dimension_semantics<parallel>, #tpu.dimension_semantics<arbitrary>], iteration_bounds = array<i64: 2, 2>, scalar_prefetch = 0 : i64, scratch_operands = 0 : i64, tpu.core_type = #tpu.core_type<tc>, window_params = [{transform_indices = @transform_0, window_bounds = array<i64: 16, 128>}, {transform_indices = @transform_1, window_bounds = array<i64: 16, 128>}, {transform_indices = @transform_2, window_bounds = array<i64: 1, 5, 128>}, {transform_indices = @transform_3, window_bounds = array<i64: 1, 1, 1>}]} {
    %c0_i32 = arith.constant 0 : i32
    %0 = arith.cmpi eq, %arg1, %c0_i32 : i32
    %1 = arith.extui %0 : i1 to i32
    %c0_i32_0 = arith.constant 0 : i32
    %2 = arith.cmpi ne, %1, %c0_i32_0 : i32
    scf.if %2 {
      %cst_53 = arith.constant 0.000000e+00 : f32
      %82 = vector.broadcast %cst_53 : f32 to vector<5x128xf32>
      %c0_54 = arith.constant 0 : index
      %c0_55 = arith.constant 0 : index
      %c0_56 = arith.constant 0 : index
      %83 = vector.load %arg4[%c0_54, %c0_55, %c0_56] : memref<1x5x128xf32, #tpu.memory_space<vmem>>, vector<1x5x128xf32>
      %84 = vector.shape_cast %83 : vector<1x5x128xf32> to vector<5x128xf32>
      %85 = vector.shape_cast %82 : vector<5x128xf32> to vector<1x5x128xf32>
      tpu.vector_store %arg4[%c0_54, %c0_55, %c0_56], %85 {strides = array<i32>} : memref<1x5x128xf32, #tpu.memory_space<vmem>>, vector<1x5x128xf32>,
      %cst_57 = arith.constant 0.000000e+00 : f32
      %86 = vector.broadcast %cst_57 : f32 to vector<1x1xf32>
      %c0_58 = arith.constant 0 : index
      %c0_59 = arith.constant 0 : index
      %c0_60 = arith.constant 0 : index
      %87 = vector.load %arg5[%c0_58, %c0_59, %c0_60] : memref<1x1x1xf32, #tpu.memory_space<vmem>>, vector<1x1x1xf32>
      %88 = vector.shape_cast %87 : vector<1x1x1xf32> to vector<1x1xf32>
      %89 = vector.shape_cast %86 : vector<1x1xf32> to vector<1x1x1xf32>
      tpu.vector_store %arg5[%c0_58, %c0_59, %c0_60], %89 {strides = array<i32>} : memref<1x1x1xf32, #tpu.memory_space<vmem>>, vector<1x1x1xf32>,
    } else {
    }
    %cst = arith.constant 1.000000e+00 : f32
    %3 = vector.broadcast %cst : f32 to vector<128x1xf32>
    %cst_1 = arith.constant 1.000000e+00 : f32
    %4 = vector.broadcast %cst_1 : f32 to vector<1x16xf32>
    %c0 = arith.constant 0 : index
    %c0_2 = arith.constant 0 : index
    %5 = vector.load %arg2[%c0, %c0_2] : memref<16x128xf32, #tpu.memory_space<vmem>>, vector<16x128xf32>
    %cst_3 = arith.constant dense<0xFF800000> : vector<16xf32>
    %6 = vector.multi_reduction <maximumf>, %5, %cst_3 [1] : vector<16x128xf32> to vector<16xf32>
    %7 = vector.shape_cast %6 : vector<16xf32> to vector<16x1xf32>
    %8 = vector.broadcast %7 : vector<16x1xf32> to vector<16x128xf32>
    %9 = arith.subf %5, %8 : vector<16x128xf32>
    %10 = math.exp %9 : vector<16x128xf32>
    %cst_4 = arith.constant dense<0.000000e+00> : vector<16x1xf32>
    %11 = tpu.matmul %10, %3, %cst_4 {dimension_numbers = #tpu.dot_dimension_numbers<[1], [0], [0], [1], [0, 0, 1, 1], [], []>} : vector<16x128xf32>, vector<128x1xf32>, vector<16x1xf32> -> vector<16x1xf32>
    %12 = tpu.reciprocal %11 : vector<16x1xf32> -> vector<16x1xf32>
    %13 = vector.broadcast %12 : vector<16x1xf32> to vector<16x128xf32>
    %14 = arith.mulf %10, %13 : vector<16x128xf32>
    %cst_5 = arith.constant 7.812500e-03 : f32
    %15 = vector.broadcast %cst_5 : f32 to vector<16x128xf32>
    %16 = arith.subf %14, %15 : vector<16x128xf32>
    %c0_6 = arith.constant 0 : index
    %c0_7 = arith.constant 0 : index
    %c0_8 = arith.constant 0 : index
    %17 = vector.load %arg4[%c0_6, %c0_7, %c0_8] : memref<1x5x128xf32, #tpu.memory_space<vmem>>, vector<1x1x128xf32>
    %18 = vector.shape_cast %17 : vector<1x1x128xf32> to vector<1x128xf32>
    %cst_9 = arith.constant dense<0.000000e+00> : vector<1x128xf32>
    %19 = tpu.matmul %4, %16, %cst_9 {dimension_numbers = #tpu.dot_dimension_numbers<[1], [0], [0], [1], [0, 0, 1, 1], [], []>} : vector<1x16xf32>, vector<16x128xf32>, vector<1x128xf32> -> vector<1x128xf32>
    %20 = arith.addf %18, %19 : vector<1x128xf32>
    %c0_10 = arith.constant 0 : index
    %c0_11 = arith.constant 0 : index
    %c0_12 = arith.constant 0 : index
    %21 = vector.load %arg4[%c0_10, %c0_11, %c0_12] : memref<1x5x128xf32, #tpu.memory_space<vmem>>, vector<1x1x128xf32>
    %22 = vector.shape_cast %21 : vector<1x1x128xf32> to vector<1x128xf32>
    %23 = vector.shape_cast %20 : vector<1x128xf32> to vector<1x1x128xf32>
    tpu.vector_store %arg4[%c0_10, %c0_11, %c0_12], %23 {strides = array<i32>} : memref<1x5x128xf32, #tpu.memory_space<vmem>>, vector<1x1x128xf32>,
    %c0_13 = arith.constant 0 : index
    %c0_14 = arith.constant 0 : index
    %24 = vector.load %arg3[%c0_13, %c0_14] : memref<16x128xf32, #tpu.memory_space<vmem>>, vector<16x128xf32>
    %cst_15 = arith.constant dense<0xFF800000> : vector<16xf32>
    %25 = vector.multi_reduction <maximumf>, %24, %cst_15 [1] : vector<16x128xf32> to vector<16xf32>
    %26 = vector.shape_cast %25 : vector<16xf32> to vector<16x1xf32>
    %27 = vector.broadcast %26 : vector<16x1xf32> to vector<16x128xf32>
    %28 = arith.subf %24, %27 : vector<16x128xf32>
    %29 = math.exp %28 : vector<16x128xf32>
    %cst_16 = arith.constant dense<0.000000e+00> : vector<16x1xf32>
    %30 = tpu.matmul %29, %3, %cst_16 {dimension_numbers = #tpu.dot_dimension_numbers<[1], [0], [0], [1], [0, 0, 1, 1], [], []>} : vector<16x128xf32>, vector<128x1xf32>, vector<16x1xf32> -> vector<16x1xf32>
    %31 = tpu.reciprocal %30 : vector<16x1xf32> -> vector<16x1xf32>
    %32 = vector.broadcast %31 : vector<16x1xf32> to vector<16x128xf32>
    %33 = arith.mulf %29, %32 : vector<16x128xf32>
    %cst_17 = arith.constant 7.812500e-03 : f32
    %34 = vector.broadcast %cst_17 : f32 to vector<16x128xf32>
    %35 = arith.subf %33, %34 : vector<16x128xf32>
    %c0_18 = arith.constant 0 : index
    %c1 = arith.constant 1 : index
    %c0_19 = arith.constant 0 : index
    %36 = vector.load %arg4[%c0_18, %c1, %c0_19] : memref<1x5x128xf32, #tpu.memory_space<vmem>>, vector<1x1x128xf32>
    %37 = vector.shape_cast %36 : vector<1x1x128xf32> to vector<1x128xf32>
    %cst_20 = arith.constant dense<0.000000e+00> : vector<1x128xf32>
    %38 = tpu.matmul %4, %35, %cst_20 {dimension_numbers = #tpu.dot_dimension_numbers<[1], [0], [0], [1], [0, 0, 1, 1], [], []>} : vector<1x16xf32>, vector<16x128xf32>, vector<1x128xf32> -> vector<1x128xf32>
    %39 = arith.addf %37, %38 : vector<1x128xf32>
    %c0_21 = arith.constant 0 : index
    %c1_22 = arith.constant 1 : index
    %c0_23 = arith.constant 0 : index
    %40 = vector.load %arg4[%c0_21, %c1_22, %c0_23] : memref<1x5x128xf32, #tpu.memory_space<vmem>>, vector<1x1x128xf32>
    %41 = vector.shape_cast %40 : vector<1x1x128xf32> to vector<1x128xf32>
    %42 = vector.shape_cast %39 : vector<1x128xf32> to vector<1x1x128xf32>
    tpu.vector_store %arg4[%c0_21, %c1_22, %c0_23], %42 {strides = array<i32>} : memref<1x5x128xf32, #tpu.memory_space<vmem>>, vector<1x1x128xf32>,
    %43 = arith.mulf %16, %16 : vector<16x128xf32>
    %cst_24 = arith.constant dense<0.000000e+00> : vector<16x1xf32>
    %44 = tpu.matmul %43, %3, %cst_24 {dimension_numbers = #tpu.dot_dimension_numbers<[1], [0], [0], [1], [0, 0, 1, 1], [], []>} : vector<16x128xf32>, vector<128x1xf32>, vector<16x1xf32> -> vector<16x1xf32>
    %c0_25 = arith.constant 0 : index
    %c2 = arith.constant 2 : index
    %c0_26 = arith.constant 0 : index
    %45 = vector.load %arg4[%c0_25, %c2, %c0_26] : memref<1x5x128xf32, #tpu.memory_space<vmem>>, vector<1x1x128xf32>
    %46 = vector.shape_cast %45 : vector<1x1x128xf32> to vector<1x128xf32>
    %cst_27 = arith.constant dense<0.000000e+00> : vector<1x128xf32>
    %47 = tpu.matmul %4, %43, %cst_27 {dimension_numbers = #tpu.dot_dimension_numbers<[1], [0], [0], [1], [0, 0, 1, 1], [], []>} : vector<1x16xf32>, vector<16x128xf32>, vector<1x128xf32> -> vector<1x128xf32>
    %48 = arith.addf %46, %47 : vector<1x128xf32>
    %c0_28 = arith.constant 0 : index
    %c2_29 = arith.constant 2 : index
    %c0_30 = arith.constant 0 : index
    %49 = vector.load %arg4[%c0_28, %c2_29, %c0_30] : memref<1x5x128xf32, #tpu.memory_space<vmem>>, vector<1x1x128xf32>
    %50 = vector.shape_cast %49 : vector<1x1x128xf32> to vector<1x128xf32>
    %51 = vector.shape_cast %48 : vector<1x128xf32> to vector<1x1x128xf32>
    tpu.vector_store %arg4[%c0_28, %c2_29, %c0_30], %51 {strides = array<i32>} : memref<1x5x128xf32, #tpu.memory_space<vmem>>, vector<1x1x128xf32>,
    %52 = arith.mulf %35, %35 : vector<16x128xf32>
    %cst_31 = arith.constant dense<0.000000e+00> : vector<16x1xf32>
    %53 = tpu.matmul %52, %3, %cst_31 {dimension_numbers = #tpu.dot_dimension_numbers<[1], [0], [0], [1], [0, 0, 1, 1], [], []>} : vector<16x128xf32>, vector<128x1xf32>, vector<16x1xf32> -> vector<16x1xf32>
    %c0_32 = arith.constant 0 : index
    %c3 = arith.constant 3 : index
    %c0_33 = arith.constant 0 : index
    %54 = vector.load %arg4[%c0_32, %c3, %c0_33] : memref<1x5x128xf32, #tpu.memory_space<vmem>>, vector<1x1x128xf32>
    %55 = vector.shape_cast %54 : vector<1x1x128xf32> to vector<1x128xf32>
    %cst_34 = arith.constant dense<0.000000e+00> : vector<1x128xf32>
    %56 = tpu.matmul %4, %52, %cst_34 {dimension_numbers = #tpu.dot_dimension_numbers<[1], [0], [0], [1], [0, 0, 1, 1], [], []>} : vector<1x16xf32>, vector<16x128xf32>, vector<1x128xf32> -> vector<1x128xf32>
    %57 = arith.addf %55, %56 : vector<1x128xf32>
    %c0_35 = arith.constant 0 : index
    %c3_36 = arith.constant 3 : index
    %c0_37 = arith.constant 0 : index
    %58 = vector.load %arg4[%c0_35, %c3_36, %c0_37] : memref<1x5x128xf32, #tpu.memory_space<vmem>>, vector<1x1x128xf32>
    %59 = vector.shape_cast %58 : vector<1x1x128xf32> to vector<1x128xf32>
    %60 = vector.shape_cast %57 : vector<1x128xf32> to vector<1x1x128xf32>
    tpu.vector_store %arg4[%c0_35, %c3_36, %c0_37], %60 {strides = array<i32>} : memref<1x5x128xf32, #tpu.memory_space<vmem>>, vector<1x1x128xf32>,
    %61 = arith.mulf %16, %35 : vector<16x128xf32>
    %cst_38 = arith.constant dense<0.000000e+00> : vector<16x1xf32>
    %62 = tpu.matmul %61, %3, %cst_38 {dimension_numbers = #tpu.dot_dimension_numbers<[1], [0], [0], [1], [0, 0, 1, 1], [], []>} : vector<16x128xf32>, vector<128x1xf32>, vector<16x1xf32> -> vector<16x1xf32>
    %c0_39 = arith.constant 0 : index
    %c4 = arith.constant 4 : index
    %c0_40 = arith.constant 0 : index
    %63 = vector.load %arg4[%c0_39, %c4, %c0_40] : memref<1x5x128xf32, #tpu.memory_space<vmem>>, vector<1x1x128xf32>
    %64 = vector.shape_cast %63 : vector<1x1x128xf32> to vector<1x128xf32>
    %cst_41 = arith.constant dense<0.000000e+00> : vector<1x128xf32>
    %65 = tpu.matmul %4, %61, %cst_41 {dimension_numbers = #tpu.dot_dimension_numbers<[1], [0], [0], [1], [0, 0, 1, 1], [], []>} : vector<1x16xf32>, vector<16x128xf32>, vector<1x128xf32> -> vector<1x128xf32>
    %66 = arith.addf %64, %65 : vector<1x128xf32>
    %c0_42 = arith.constant 0 : index
    %c4_43 = arith.constant 4 : index
    %c0_44 = arith.constant 0 : index
    %67 = vector.load %arg4[%c0_42, %c4_43, %c0_44] : memref<1x5x128xf32, #tpu.memory_space<vmem>>, vector<1x1x128xf32>
    %68 = vector.shape_cast %67 : vector<1x1x128xf32> to vector<1x128xf32>
    %69 = vector.shape_cast %66 : vector<1x128xf32> to vector<1x1x128xf32>
    tpu.vector_store %arg4[%c0_42, %c4_43, %c0_44], %69 {strides = array<i32>} : memref<1x5x128xf32, #tpu.memory_space<vmem>>, vector<1x1x128xf32>,
    %70 = arith.mulf %44, %53 : vector<16x1xf32>
    %cst_45 = arith.constant 1.000000e-16 : f32
    %71 = vector.broadcast %cst_45 : f32 to vector<16x1xf32>
    %72 = arith.maximumf %70, %71 : vector<16x1xf32>
    %73 = math.rsqrt %72 : vector<16x1xf32>
    %74 = arith.mulf %62, %73 : vector<16x1xf32>
    %c0_46 = arith.constant 0 : index
    %c0_47 = arith.constant 0 : index
    %c0_48 = arith.constant 0 : index
    %75 = vector.load %arg5[%c0_46, %c0_47, %c0_48] : memref<1x1x1xf32, #tpu.memory_space<vmem>>, vector<1x1x1xf32>
    %76 = vector.shape_cast %75 : vector<1x1x1xf32> to vector<1x1xf32>
    %cst_49 = arith.constant dense<0.000000e+00> : vector<1x1xf32>
    %77 = tpu.matmul %4, %74, %cst_49 {dimension_numbers = #tpu.dot_dimension_numbers<[1], [0], [0], [1], [0, 0, 1, 1], [], []>} : vector<1x16xf32>, vector<16x1xf32>, vector<1x1xf32> -> vector<1x1xf32>
    %78 = arith.addf %76, %77 : vector<1x1xf32>
    %c0_50 = arith.constant 0 : index
    %c0_51 = arith.constant 0 : index
    %c0_52 = arith.constant 0 : index
    %79 = vector.load %arg5[%c0_50, %c0_51, %c0_52] : memref<1x1x1xf32, #tpu.memory_space<vmem>>, vector<1x1x1xf32>
    %80 = vector.shape_cast %79 : vector<1x1x1xf32> to vector<1x1xf32>
    %81 = vector.shape_cast %78 : vector<1x1xf32> to vector<1x1x1xf32>
    tpu.vector_store %arg5[%c0_50, %c0_51, %c0_52], %81 {strides = array<i32>} : memref<1x1x1xf32, #tpu.memory_space<vmem>>, vector<1x1x1xf32>,
    return
  }
  func.func @transform_0(%arg0: i32, %arg1: i32) -> (i32, i32) {
    %c2_i32 = arith.constant 2 : i32
    %0 = arith.muli %arg0, %c2_i32 : i32
    %1 = arith.addi %0, %arg1 : i32
    %c3_i32 = arith.constant 3 : i32
    %2 = arith.minsi %1, %c3_i32 : i32
    %c0_i32 = arith.constant 0 : i32
    %c0_i32_0 = arith.constant 0 : i32
    return %2, %c0_i32 : i32, i32
  }
  func.func @transform_1(%arg0: i32, %arg1: i32) -> (i32, i32) {
    %c2_i32 = arith.constant 2 : i32
    %0 = arith.muli %arg0, %c2_i32 : i32
    %1 = arith.addi %0, %arg1 : i32
    %c3_i32 = arith.constant 3 : i32
    %2 = arith.minsi %1, %c3_i32 : i32
    %c0_i32 = arith.constant 0 : i32
    %c0_i32_0 = arith.constant 0 : i32
    return %2, %c0_i32 : i32, i32
  }
  func.func @transform_2(%arg0: i32, %arg1: i32) -> (i32, i32, i32) {
    %c0_i32 = arith.constant 0 : i32
    %c0_i32_0 = arith.constant 0 : i32
    %c0_i32_1 = arith.constant 0 : i32
    return %arg0, %c0_i32, %c0_i32_0 : i32, i32, i32
  }
  func.func @transform_3(%arg0: i32, %arg1: i32) -> (i32, i32, i32) {
    %c0_i32 = arith.constant 0 : i32
    %c0_i32_0 = arith.constant 0 : i32
    %c0_i32_1 = arith.constant 0 : i32
    return %arg0, %c0_i32, %c0_i32_0 : i32, i32, i32
  }
}

</mosaic_0001>

<bundles_post_ra>
// kernel: tpu_custom_call.1
= control target key start
LH: loop header
LB: loop body
LE: loop exit
PB: predicated region body
PF: predicated region fallthrough
CT: control target
= control target key end

     0   :  { %s1389_s0 = inlined_call_operand.hbm [shape: f32[64,128], index: 0, kind: input, shape index: {}]   ;;  %s1390_s1 = inlined_call_operand.hbm [shape: f32[64,128], index: 1, kind: input, shape index: {}]   ;;  %s1391_s2 = inlined_call_operand.vmem [shape: f32[2,5,128], index: 2, kind: output, shape index: {0}]   ;;  %s1392_s3 = inlined_call_operand.vmem [shape: f32[2,1,1], index: 3, kind: output, shape index: {1}]  }
   0x1   :  { %1395 = sst [smem:[#allocation10_spill]] %s1389_s0 }
   0x2   :  { %9 = vsyncpa [#allocation3], 0 }
   0x3   :  { %11 = vsyncpa [#allocation3 + $0x1], 0 }
   0x4   :  { %12 = vsyncpa [#allocation5], 0 }
   0x5   :  { %14 = vsyncpa [#allocation5 + $0x1], 0  ;;  %s1113_s12 = smov 0   ;;  %s1115_s13 = smov 0  }
   0x6   :  { %s1117_s14 = smov 0   ;;  %s1119_s15 = smov 0  }
   0x7   :  { %s1121_s16 = smov 0   ;;  %s1123_s17 = smov 0  }
   0x8   :  { %s1125_s18 = smov 0   ;;  %s1127_s19 = smov 0  }
   0x9 LB: > { %s817_s20 = sadd.s32 4294967295, %s1086_s19   ;;  %s29_s21 = sadd.s32 1, %s1078_s17  ;;  %s1086_s19 = sphi %s1127_s19, %s20_s19   ;;  %s1082_s18 = sphi %s1125_s18, %s1410_s18   ;;  %s1078_s17 = sphi %s1123_s17, %s1409_s17   ;;  %s1074_s16 = sphi %s1121_s16, %s1408_s16   ;;  %s1070_s15 = sphi %s1119_s15, %s1407_s15   ;;  %s1066_s14 = sphi %s1117_s14, %s1406_s14   ;;  %s1062_s13 = sphi %s1115_s13, %s1405_s13   ;;  %s1058_s12 = sphi %s1113_s12, %s1404_s12  }
   0xa   : > { %p30_p0 = scmp.ge.s32.totalorder %s29_s21, 2  ;;  %s32_s22 = sadd.s32 1, %s1082_s18 }
   0xb   : > { %s819_s23 = sshll.u32 %s1082_s18, 1  ;;  %s47_s24 = sadd.s32 1, %s1066_s14 }
   0xc   : > { %s1412_s21 = smov (%p30_p0, %s29_s21), 0  ;;  %s1414_s22 = smov (!%p30_p0, %s32_s22), %s1082_s18 }
   0xd   : > { %1396 = sst [smem:[#allocation8_spill]] %s1412_s21  ;;  %s37_s25 = sadd.s32 %s1078_s17, %s819_s23 }
   0xe   : > { %p54_p1 = scmp.ne.s32.totalorder %s1066_s14, %s1062_s13  ;;  %p34_p2 = scmp.ge.s32.totalorder %s1414_s22, 2 }
   0xf   : > { %p38_p3 = scmp.lt.s32.totalorder %s37_s25, 3  ;;  %p55_p4 = scmp.eq.s32.totalorder %s1086_s19, 0 }
  0x10   : > { %p60_p5 = scmp.ne.s32.totalorder %s1062_s13, %s1058_s12  ;;  %s1416_s22 = smov (%p34_p2, %s1414_s22), 0 }
  0x11   : > { %1397 = sst [smem:[#allocation9_spill]] %s1416_s22  ;;  %s1418_s25 = smov (!%p38_p3, %s37_s25), 3 }
  0x12   : > { %s820_s26 = sshll.u32 %s1416_s22, 1  ;;  %p1169_p6 = por %p55_p4, %p54_p1 }
  0x13   : > { %s41_s28 = sadd.s32 %s820_s26, %s1412_s21  ;;  %p61_p7 = scmp.eq.s32.totalorder %s817_s20, 0 }
  0x14   : > { %p42_p8 = scmp.lt.s32.totalorder %s41_s28, 3  ;;  %p863_p10 = scmp.lt.s32.totalorder %s1086_s19, 4 }
  0x15   : > { %p1174_p9 = por %p61_p7, %p60_p5  ;;  %s1180_s30 = sand.u32 1, %s1066_s14  }
  0x16   : > { %s1420_s28 = smov (!%p42_p8, %s41_s28), 3  ;;  %s850_s4 = sshll.u32 %s1418_s25, 4 }
  0x17   : > { %s44_s5 = ssub.s32 %s1418_s25, %s1420_s28  ;;  %s825_s6 = sshll.u32 %s1180_s30, 4 }
  0x18   : > { %p45_p11 = scmp.eq.s32.totalorder %s44_s5, 0  ;;  %s1400_s0 = sld [smem:[#allocation10_spill]] }
  0x19   : > { %s174_s12 = scalar_lea.vmem [#allocation2], %s825_s6  ;;  %p1195_p12 = pnand %p863_p10, %p1169_p6 }
  0x1a   : > { %s1189_s10 = scalar_select %p45_p11, %s1066_s14, %s47_s24  }
  0x1b   : > { %s186_s20 = sshll.u32 %s174_s12, 4  ;;  %p833_p13 = scmp.ge.s32.totalorder %s1086_s19, 1  ;;  %s187_s20 = int_to_ptr.vmem [resolvable:$true] %s186_s20 }
  0x1c   : > { %p220_p0 = scmp.lt.s32.totalorder %s1086_s19, 5  ;;  %s171_s25 = scalar_lea.sflag [#allocation3], %s1180_s30 }
  0x1d   : > { %s1088_s26 = smov 128   ;;  %s1089_s24 = smov 8  }
  0x1e   : > { %s183_s9 = scalar_lea.hbm %s1400_s0, %s850_s4  ;;  %p221_p1 = pnand %p833_p13, %p220_p0 }
  0x1f   : > { %s184_s11 = sshll.u32 %s183_s9, 4  ;;  %s209_s7 = scalar_lea.hbm %s1390_s1, %s850_s4  ;;  %s185_s11 = int_to_ptr.hbm [resolvable:$true] %s184_s11 }
  0x20   : > { %859 = dma.hbm_to_vmem [thread:$0]  (!%p1195_p12), %s185_s11, 256, %s187_s20, %s171_s25, %s1088_s26, %s1088_s26, %s1089_s24  }
  0x21   : > { %s210_s27 = sshll.u32 %s209_s7, 4  ;;  %s200_s8 = scalar_lea.vmem [#allocation4], %s825_s6  ;;  %s211_s27 = int_to_ptr.hbm [resolvable:$true] %s210_s27 }
  0x22   : > { %s212_s9 = sshll.u32 %s200_s8, 4  ;;  %s197_s12 = scalar_lea.sflag [#allocation5], %s1180_s30  ;;  %s213_s9 = int_to_ptr.vmem [resolvable:$true] %s212_s9 }
  0x23   : > { %862 = dma.hbm_to_vmem [thread:$0]  (!%p1195_p12), %s211_s27, 256, %s213_s9, %s197_s12, %s1088_s26, %s1088_s26, %s1089_s24  }
  0x24   : > { %224 = sbr.rel (%p221_p1) target bundleno = 786 (0x312), region = 28  ;;  %s226_s0 = sand.u32 (!%p221_p1), 1, %s1062_s13  }
  0x25   : > { %s834_s22 = sshll.u32 (!%p221_p1), %s226_s0, 4  ;;  %s227_s21 = scalar_lea.sflag (!%p221_p1), [#allocation3], %s226_s0 }
  0x26   : > { %s230_s11 = scalar_lea.vmem (!%p221_p1), [#allocation2], %s834_s22 }
  0x29   : > { %1049 = dma.done.wait (%p1174_p9), %s227_s21, 256  }
  0x2a   : > { %1051 = vsyncadd (%p1174_p9), %s227_s21, 4294967040  ;;  %s237_s4 = scalar_lea.sflag [#allocation5], %s226_s0  ;;  %s240_s6 = scalar_lea.vmem [#allocation4], %s834_s22 }
  0x2b   : > { %1053 = dma.done.wait (%p1174_p9), %s237_s4, 256  }
  0x2c   : > { %1055 = vsyncadd (%p1174_p9), %s237_s4, 4294967040  ;;  %p281_p2 = scmp.lt.s32.totalorder %s1074_s16, 1  ;;  %p837_p3 = scmp.ne.s32.totalorder %s1070_s15, 0 }
  0x2e   : > { %s1422_s16 = smov (!%p281_p2, %s1074_s16), 1  ;;  %291 = sbr.rel (%p837_p3) target bundleno = 54 (0x36), region = 40 }
  0x2f   : > { %s836_s30 = sshll.u32 %s1422_s16, 3  ;;  %s1224_s25 = scalar_lea.vmem %s1392_s3, %s1422_s16 }
  0x30   : > { %s1229_s0 = scalar_lea.vmem %s1391_s2, %s836_s30 }
  0x33   : > { %vm293_vm0 = vcmask 0   ;;  %v1090_v0 = vmov 0.0  }
  0x34   : > { %292 = vst [vmem:[%s1229_s0] sm:$0x1f] %v1090_v0 }
  0x35   : > { %294 = vst.msk [vmem:[%s1224_s25] sm:$0x1] %vm293_vm0, %v1090_v0 }
  0x36 PF: > { %v399_v1 = vld [vmem:[%s240_s6] sm:$0xff]  ;;  %v1091_v3 = vmov 1.0   ;;  %v400_v4 = vld [vmem:[%s240_s6 + $0x8] sm:$0xff]  ;;  %v1092_v22 = vmov 0  }
  0x37   : > { %v295_v2 = vld [vmem:[%s230_s11] sm:$0xff]  ;;  %401 = vmax.xlane.f32.xlu0 %v399_v1  ;;  %307 = vmatpush.msra.mxu0 %v1091_v3  ;;  %v296_v5 = vld [vmem:[%s230_s11 + $0x8] sm:$0xff] }
  0x38   : > { %297 = vmax.xlane.f32.xlu1 %v295_v2  ;;  %411 = vmatpush.msra.mxu2 %v1091_v3 }
  0x39   : > { %308 = vmatpush.msra.mxu0 %v1091_v3  ;;  %935 = vset.pattern.permute.xlu1 %v1092_v22 }
  0x3a   : > { %412 = vmatpush.msra.mxu2 %v1091_v3  ;;  %934 = vset.pattern.permute.xlu0 %v1092_v22 }
  0x3b   : > { %309 = vmatpush.msra.mxu0 %v1091_v3  ;;  %933 = vset.pattern.permute.xlu2 %v1092_v22 }
  0x3c   : > { %413 = vmatpush.msra.mxu2 %v1091_v3 }
  0x3d   : > { %310 = vmatpush.msra.mxu0 %v1091_v3 }
  0x3e   : > { %414 = vmatpush.msra.mxu2 %v1091_v3 }
  0x3f   : > { %403 = vmax.xlane.f32.xlu0 %v400_v4  ;;  %311 = vmatpush.msra.mxu0 %v1091_v3 }
  0x40   : > { %299 = vmax.xlane.f32.xlu1 %v296_v5  ;;  %415 = vmatpush.msra.mxu2 %v1091_v3 }
  0x41   : > { %312 = vmatpush.msra.mxu0 %v1091_v3 }
  0x42   : > { %416 = vmatpush.msra.mxu2 %v1091_v3 }
  0x43   : > { %313 = vmatpush.msra.mxu0 %v1091_v3 }
  0x44   : > { %417 = vmatpush.msra.mxu2 %v1091_v3 }
  0x45   : > { %314 = vmatpush.msra.mxu0 %v1091_v3 }
  0x46   : > { %418 = vmatpush.msra.mxu2 %v1091_v3 }
  0x47   : > { %315 = vmatpush.msra.mxu0 %v1091_v3 }
  0x48   : > { %419 = vmatpush.msra.mxu2 %v1091_v3 }
  0x49   : > { %316 = vmatpush.msra.mxu0 %v1091_v3 }
  0x4a   : > { %420 = vmatpush.msra.mxu2 %v1091_v3 }
  0x4b   : > { %317 = vmatpush.msra.mxu0 %v1091_v3 }
  0x4c   : > { %421 = vmatpush.msra.mxu2 %v1091_v3 }
  0x4d   : > { %318 = vmatpush.msra.mxu0 %v1091_v3 }
  0x4e   : > { %422 = vmatpush.msra.mxu2 %v1091_v3 }
  0x4f   : > { %319 = vmatpush.msra.mxu0 %v1091_v3 }
  0x50   : > { %423 = vmatpush.msra.mxu2 %v1091_v3 }
  0x51   : > { %320 = vmatpush.msra.mxu0 %v1091_v3 }
  0x52   : > { %424 = vmatpush.msra.mxu2 %v1091_v3 }
  0x53   : > { %321 = vmatpush.msra.mxu0 %v1091_v3 }
  0x54   : > { %425 = vmatpush.msra.mxu2 %v1091_v3 }
  0x55   : > { %322 = vmatpush.msra.mxu0 %v1091_v3 }
  0x56   : > { %426 = vmatpush.msra.mxu2 %v1091_v3 }
  0x58   : > { %597 = vmatpush.msrb.mxu2 %v1091_v3 }
  0x5a   : > { %598 = vmatpush.msrb.mxu2 %v1091_v3 }
  0x5c   : > { %599 = vmatpush.msrb.mxu2 %v1091_v3 }
  0x5e   : > { %600 = vmatpush.msrb.mxu2 %v1091_v3 }
  0x60   : > { %601 = vmatpush.msrb.mxu2 %v1091_v3 }
  0x62   : > { %602 = vmatpush.msrb.mxu2 %v1091_v3 }
  0x64   : > { %603 = vmatpush.msrb.mxu2 %v1091_v3 }
  0x66   : > { %604 = vmatpush.msrb.mxu2 %v1091_v3 }
  0x68   : > { %605 = vmatpush.msrb.mxu2 %v1091_v3 }
  0x6a   : > { %606 = vmatpush.msrb.mxu2 %v1091_v3 }
  0x6c   : > { %607 = vmatpush.msrb.mxu2 %v1091_v3 }
  0x6e   : > { %608 = vmatpush.msrb.mxu2 %v1091_v3 }
  0x70   : > { %609 = vmatpush.msrb.mxu2 %v1091_v3 }
  0x72   : > { %610 = vmatpush.msrb.mxu2 %v1091_v3 }
  0x74   : > { %611 = vmatpush.msrb.mxu2 %v1091_v3 }
  0x76   : > { %612 = vmatpush.msrb.mxu2 %v1091_v3 }
  0xaa   : > { %v402_v6 = vpop.xlane.xlu0 %401 }
  0xab   : > { %v298_v7 = vpop.xlane.xlu1 %297  ;;  %v405_v8 = vsub.f32 %v399_v1, %v402_v6 }
  0xac   : > { %v301_v9 = vsub.f32 %v295_v2, %v298_v7 }
  0xad   : > { %v407_v10 = vmul.f32 1.442695, %v405_v8 }
  0xae   : > { %v303_v11 = vmul.f32 1.442695, %v301_v9 }
  0xaf   : > { %936 = vpow2.f32 %v407_v10 }
  0xb0   : > { %938 = vpow2.f32 %v303_v11 }
  0xb2   : > { %v404_v12 = vpop.xlane.xlu0 %403 }
  0xb3   : > { %v300_v13 = vpop.xlane.xlu1 %299  ;;  %v406_v14 = vsub.f32 %v400_v4, %v404_v12 }
  0xb4   : > { %v302_v15 = vsub.f32 %v296_v5, %v300_v13 }
  0xb5   : > { %v1282_v16 = vpop.eup %936  ;;  %v409_v17 = vmul.f32 1.442695, %v406_v14 }
  0xb6   : > { %v305_v18 = vmul.f32 1.442695, %v302_v15  ;;  %v1284_v19 = vpop.eup %938  ;;  %427 = vmatmul.f32.vlgmr.msra.gmra.mxu2 %v1282_v16 }
  0xb7   : > { %940 = vpow2.f32 %v409_v17  ;;  %323 = vmatmul.f32.vlgmr.msra.gmra.mxu0 %v1284_v19 }
  0xb8   : > { %942 = vpow2.f32 %v305_v18 }
  0xbd   : > { %v1288_v20 = vpop.eup %940 }
  0xbe   : > { %v1290_v21 = vpop.eup %942  ;;  %430 = vmatmul.f32.gmra.mxu2 %v1288_v20 }
  0xbf   : > { %326 = vmatmul.f32.gmra.mxu0 %v1290_v21 }
 0x134   : > { %v324_v23 = vpop.f32.mrf.mxu0 }
 0x135   : > { %944 = vrcp.f32 %v324_v23  ;;  %v341_v29 = vand.u32 2147483648, %v324_v23  ;;  %v339_v31 = vand.u32 2147483647, %v324_v23  ;;  %vm335_vm2 = vweird.f32 %v324_v23 }
 0x137   : > { %v342_v35 = vor.u32 1.1754944e-38, %v341_v29  ;;  %vm340_vm4 = vcmp.eq.f32.partialorder %v339_v31, 8.507059e+37 }
 0x139   : > { %v1294_v24 = vpop.f32.mrf.mxu2 }
 0x13a   : > { %v445_v61 = vand.u32 2147483648, %v1294_v24  ;;  %vm439_vm13 = vweird.f32 %v1294_v24  ;;  %v443_v63 = vand.u32 2147483647, %v1294_v24 }
 0x13b   : > { %v945_v25 = vpop.eup %944 }
 0x13c   : > { %v331_v26 = vmul.f32 %v945_v25, %v324_v23  ;;  %v327_v27 = vpop.f32.mrf.mxu0  ;;  %vm336_vm1 = vweird.f32 %v945_v25  ;;  %v446_v0 = vor.u32 1.1754944e-38, %v445_v61  ;;  %vm444_vm0 = vcmp.eq.f32.partialorder %v443_v63, 8.507059e+37  ;;  %v669_v63 = vld [vmem:[%s1224_s25] sm:$0x1] }
 0x13d   : > { %946 = vrcp.f32 %v327_v27  ;;  %vm337_vm3 = vmor %vm335_vm2, %vm336_vm1  ;;  %v355_v42 = vand.u32 2147483648, %v327_v27  ;;  %v353_v45 = vand.u32 2147483647, %v327_v27  ;;  %vm349_vm6 = vweird.f32 %v327_v27 }
 0x13e   : > { %v332_v28 = vsub.f32 1.0, %v331_v26  ;;  %948 = vrcp.f32 %v1294_v24  ;;  %vm373_vm1 = vcmask 130048  }
 0x13f   : > { %v356_v51 = vor.u32 1.1754944e-38, %v355_v42  ;;  %vm354_vm8 = vcmp.eq.f32.partialorder %v353_v45, 8.507059e+37 }
 0x140   : > { %v333_v30 = vmul.f32 %v945_v25, %v332_v28  ;;  %v524_v28 = vld [vmem:[%s1229_s0 + $0x2] sm:$0x1] }
 0x141   : > { %v431_v32 = vpop.f32.mrf.mxu2 }
 0x142   : > { %950 = vrcp.f32 %v431_v32  ;;  %v334_v33 = vadd.f32 %v945_v25, %v333_v30  ;;  %v459_v48 = vand.u32 2147483648, %v431_v32  ;;  %vm453_vm9 = vweird.f32 %v431_v32 }
 0x143   : > { %v947_v34 = vpop.eup %946  ;;  %v457_v55 = vand.u32 2147483647, %v431_v32 }
 0x144   : > { %v949_v36 = vpop.eup %948  ;;  %v345_v37 = vmul.f32 %v947_v34, %v327_v27  ;;  %v338_v38 = vsel %vm337_vm3, %v945_v25, %v334_v33  ;;  %vm350_vm5 = vweird.f32 %v947_v34  ;;  %v460_v56 = vor.u32 1.1754944e-38, %v459_v48  ;;  %v372_v25 = vld [vmem:[%s1229_s0] sm:$0x1] }
 0x145   : > { %v343_v39 = vsel %vm340_vm4, %v342_v35, %v338_v38  ;;  %v435_v41 = vmul.f32 %v949_v36, %v1294_v24  ;;  %vm351_vm7 = vmor %vm349_vm6, %vm350_vm5  ;;  %vm458_vm12 = vcmp.eq.f32.partialorder %v457_v55, 8.507059e+37  ;;  %vm440_vm14 = vweird.f32 %v949_v36 }
 0x146   : > { %v346_v40 = vsub.f32 1.0, %v345_v37  ;;  %360 = vperm.xlu1 %935, %v343_v39   ;;  %vm441_vm15 = vmor %vm439_vm13, %vm440_vm14  ;;  %v620_v39 = vld [vmem:[%s1229_s0 + $0x4] sm:$0x1] }
 0x147   : > { %v436_v49 = vsub.f32 1.0, %v435_v41 }
 0x148   : > { %v951_v43 = vpop.eup %950  ;;  %v347_v44 = vmul.f32 %v947_v34, %v346_v40 }
 0x149   : > { %v449_v46 = vmul.f32 %v951_v43, %v431_v32  ;;  %vm454_vm10 = vweird.f32 %v951_v43  ;;  %v437_v58 = vmul.f32 %v949_v36, %v436_v49 }
 0x14a   : > { %v348_v47 = vadd.f32 %v947_v34, %v347_v44  ;;  %vm455_vm11 = vmor %vm453_vm9, %vm454_vm10 }
 0x14b   : > { %v450_v50 = vsub.f32 1.0, %v449_v46  ;;  %v438_v62 = vadd.f32 %v949_v36, %v437_v58 }
 0x14c   : > { %v352_v52 = vsel %vm351_vm7, %v947_v34, %v348_v47 }
 0x14d   : > { %v357_v53 = vsel %vm354_vm8, %v356_v51, %v352_v52  ;;  %v451_v54 = vmul.f32 %v951_v43, %v450_v50  ;;  %v442_v1 = vsel %vm441_vm15, %v949_v36, %v438_v62  ;;  %v572_v36 = vld [vmem:[%s1229_s0 + $0x3] sm:$0x1]  ;;  %vm691_vm8 = vcmask 0  }
 0x14e   : > { %365 = vperm.xlu0 %934, %v357_v53   ;;  %v447_v2 = vsel %vm444_vm0, %v446_v0, %v442_v1 }
 0x14f   : > { %v452_v57 = vadd.f32 %v951_v43, %v451_v54 }
 0x151   : > { %v456_v59 = vsel %vm455_vm11, %v951_v43, %v452_v57 }
 0x152   : > { %v461_v60 = vsel %vm458_vm12, %v460_v56, %v456_v59 }
 0x153   : > { %469 = vperm.xlu2 %933, %v461_v60  }
 0x15b   : > { %464 = vperm.xlu2 %933, %v447_v2  }
 0x1ad   : > { %v470_v4 = vpop.permute.xlu2 %469 }
 0x1ae   : > { %v473_v5 = vmul.f32 %v1288_v20, %v470_v4 }
 0x1b0   : > { %v842_v6 = vadd.f32 -0.0078125, %v473_v5 }
 0x1b2   : > { %491 = vmatpush.msra.mxu3 %v842_v6  ;;  %v1302_v7 = vmul.f32 %v842_v6, %v842_v6 }
 0x1b4   : > { %587 = vmatpush.msrb.mxu0 %v1302_v7 }
 0x1b5   : > { %v465_v8 = vpop.permute.xlu2 %464 }
 0x1b6   : > { %v472_v9 = vmul.f32 %v1282_v16, %v465_v8 }
 0x1b8   : > { %v841_v10 = vadd.f32 -0.0078125, %v472_v9  ;;  %v361_v11 = vpop.permute.xlu1 %360 }
 0x1b9   : > { %v368_v12 = vmul.f32 %v1284_v19, %v361_v11 }
 0x1ba   : > { %492 = vmatpush.msra.mxu3 %v841_v10  ;;  %v547_v13 = vmul.f32 %v841_v10, %v841_v10 }
 0x1bb   : > { %v838_v14 = vadd.f32 -0.0078125, %v368_v12  ;;  %843 = vmatmul.msk.f32.vlgmr.msra.gmra.mxu3 %vm373_vm1, %v1091_v3 }
 0x1bc   : > { %588 = vmatpush.msrb.mxu0 %v547_v13 }
 0x1bd   : > { %v595_v15 = vmul.f32 %v841_v10, %v838_v14  ;;  %845 = vmatmul.msk.f32.vlgmr.msrb.gmra.mxu0 %vm373_vm1, %v1091_v3  ;;  %v499_v19 = vmul.f32 %v838_v14, %v838_v14 }
 0x1bf   : > { %613 = vmatmul.f32.vlgmr.msrb.gmra.mxu2 %v595_v15 }
 0x1c0   : > { %v366_v17 = vpop.permute.xlu0 %365 }
 0x1c1   : > { %v369_v16 = vmul.f32 %v1290_v21, %v366_v17  ;;  %v476_v21 = vld [vmem:[%s1229_s0 + $0x1] sm:$0x1] }
 0x1c3   : > { %v839_v18 = vadd.f32 -0.0078125, %v369_v16 }
 0x1c5   : > { %391 = vmatpush.msra.mxu1 %v839_v18  ;;  %v500_v20 = vmul.f32 %v839_v18, %v839_v18  ;;  %v596_v22 = vmul.f32 %v842_v6, %v839_v18 }
 0x1c7   : > { %392 = vmatpush.msra.mxu1 %v838_v14  ;;  %539 = vmatpush.msrb.mxu3 %v500_v20 }
 0x1c8   : > { %616 = vmatmul.f32.gmra.mxu2 %v596_v22  ;;  %840 = vmatmul.msk.f32.vlgmr.msra.gmra.mxu1 %vm373_vm1, %v1091_v3 }
 0x1c9   : > { %501 = vmatpush.msrb.mxu1 %v1091_v3  ;;  %540 = vmatpush.msrb.mxu3 %v499_v19 }
 0x1ca   : > { %844 = vmatmul.msk.f32.vlgmr.msrb.gmra.mxu3 %vm373_vm1, %v1091_v3 }
 0x1cb   : > { %502 = vmatpush.msrb.mxu1 %v1091_v3  ;;  %549 = vmatpush.msra.mxu3 %v1091_v3 }
 0x1cd   : > { %503 = vmatpush.msrb.mxu1 %v1091_v3  ;;  %550 = vmatpush.msra.mxu3 %v1091_v3 }
 0x1cf   : > { %504 = vmatpush.msrb.mxu1 %v1091_v3  ;;  %551 = vmatpush.msra.mxu3 %v1091_v3 }
 0x1d1   : > { %505 = vmatpush.msrb.mxu1 %v1091_v3  ;;  %552 = vmatpush.msra.mxu3 %v1091_v3 }
 0x1d3   : > { %506 = vmatpush.msrb.mxu1 %v1091_v3  ;;  %553 = vmatpush.msra.mxu3 %v1091_v3 }
 0x1d5   : > { %507 = vmatpush.msrb.mxu1 %v1091_v3  ;;  %554 = vmatpush.msra.mxu3 %v1091_v3 }
 0x1d7   : > { %508 = vmatpush.msrb.mxu1 %v1091_v3  ;;  %555 = vmatpush.msra.mxu3 %v1091_v3 }
 0x1d9   : > { %509 = vmatpush.msrb.mxu1 %v1091_v3  ;;  %556 = vmatpush.msra.mxu3 %v1091_v3 }
 0x1db   : > { %510 = vmatpush.msrb.mxu1 %v1091_v3  ;;  %557 = vmatpush.msra.mxu3 %v1091_v3 }
 0x1dd   : > { %511 = vmatpush.msrb.mxu1 %v1091_v3  ;;  %558 = vmatpush.msra.mxu3 %v1091_v3 }
 0x1df   : > { %512 = vmatpush.msrb.mxu1 %v1091_v3  ;;  %559 = vmatpush.msra.mxu3 %v1091_v3 }
 0x1e1   : > { %513 = vmatpush.msrb.mxu1 %v1091_v3  ;;  %560 = vmatpush.msra.mxu3 %v1091_v3 }
 0x1e3   : > { %514 = vmatpush.msrb.mxu1 %v1091_v3  ;;  %561 = vmatpush.msra.mxu3 %v1091_v3 }
 0x1e5   : > { %515 = vmatpush.msrb.mxu1 %v1091_v3  ;;  %562 = vmatpush.msra.mxu3 %v1091_v3 }
 0x1e7   : > { %516 = vmatpush.msrb.mxu1 %v1091_v3  ;;  %563 = vmatpush.msra.mxu3 %v1091_v3 }
 0x1e8   : > { %517 = vmatmul.f32.vlgmr.msrb.gmra.mxu1 %v499_v19 }
 0x1e9   : > { %635 = vmatpush.msra.mxu1 %v596_v22  ;;  %564 = vmatpush.msra.mxu3 %v1091_v3 }
 0x1ea   : > { %565 = vmatmul.f32.vlgmr.msra.gmra.mxu3 %v547_v13 }
 0x1eb   : > { %636 = vmatpush.msra.mxu1 %v595_v15 }
 0x1f0   : > { %520 = vmatmul.f32.gmra.mxu1 %v500_v20 }
 0x1f2   : > { %568 = vmatmul.f32.gmra.mxu3 %v1302_v7 }
 0x1f8   : > { %846 = vmatmul.msk.f32.vlgmr.msra.gmra.mxu1 %vm373_vm1, %v1091_v3 }
 0x23a   : > { %v590_v37 = vpop.f32.mrf.mxu0 }
 0x23b   : > { %v593_v38 = vadd.f32 %v590_v37, %v572_v36 }
 0x23d   : > { %594 = vst [vmem:[%s1229_s0 + $0x3] sm:$0x1] %v593_v38 }
 0x23e   : > { %v494_v23 = vpop.f32.mrf.mxu3 }
 0x23f   : > { %v497_v24 = vadd.f32 %v494_v23, %v476_v21 }
 0x241   : > { %498 = vst [vmem:[%s1229_s0 + $0x1] sm:$0x1] %v497_v24 }
 0x242   : > { %v614_v50 = vpop.f32.mrf.mxu2 }
 0x245   : > { %v394_v26 = vpop.f32.mrf.mxu1 }
 0x246   : > { %v397_v27 = vadd.f32 %v394_v26, %v372_v25 }
 0x248   : > { %398 = vst [vmem:[%s1229_s0] sm:$0x1] %v397_v27 }
 0x24b   : > { %v617_v58 = vpop.f32.mrf.mxu2 }
 0x24d   : > { %v542_v29 = vpop.f32.mrf.mxu3 }
 0x24e   : > { %v545_v30 = vadd.f32 %v542_v29, %v524_v28 }
 0x250   : > { %546 = vst [vmem:[%s1229_s0 + $0x2] sm:$0x1] %v545_v30 }
 0x265   : > { %v518_v31 = vpop.f32.mrf.mxu1 }
 0x26d   : > { %v521_v32 = vpop.f32.mrf.mxu1  ;;  %v566_v33 = vpop.f32.mrf.mxu3 }
 0x26e   : > { %v643_v34 = vmul.f32 %v566_v33, %v518_v31 }
 0x270   : > { %v645_v35 = vmax.f32 %v643_v34, 1e-16 }
 0x272   : > { %952 = vrsqrt.f32 %v645_v35  ;;  %vm653_vm4 = vweird.f32 %v645_v35 }
 0x275   : > { %v569_v40 = vpop.f32.mrf.mxu3  ;;  %v638_v41 = vpop.f32.mrf.mxu1 }
 0x276   : > { %v644_v42 = vmul.f32 %v569_v40, %v521_v32  ;;  %v641_v43 = vadd.f32 %v638_v41, %v620_v39 }
 0x278   : > { %v953_v44 = vpop.eup %952  ;;  %v646_v45 = vmax.f32 %v644_v42, 1e-16  ;;  %642 = vst [vmem:[%s1229_s0 + $0x4] sm:$0x1] %v641_v43 }
 0x279   : > { %v648_v46 = vmul.f32 %v953_v44, %v645_v35  ;;  %vm654_vm2 = vweird.f32 %v953_v44 }
 0x27a   : > { %954 = vrsqrt.f32 %v646_v45  ;;  %vm655_vm5 = vmor %vm653_vm4, %vm654_vm2  ;;  %vm663_vm6 = vweird.f32 %v646_v45 }
 0x27b   : > { %v649_v47 = vmul.f32 %v953_v44, %v648_v46 }
 0x27d   : > { %v650_v48 = vmul.f32 0.5, %v649_v47 }
 0x27f   : > { %v651_v52 = vsub.f32 1.5, %v650_v48 }
 0x280   : > { %v955_v49 = vpop.eup %954 }
 0x281   : > { %v658_v51 = vmul.f32 %v955_v49, %v646_v45  ;;  %vm664_vm3 = vweird.f32 %v955_v49  ;;  %v652_v56 = vmul.f32 %v953_v44, %v651_v52 }
 0x282   : > { %vm665_vm7 = vmor %vm663_vm6, %vm664_vm3 }
 0x283   : > { %v659_v53 = vmul.f32 %v955_v49, %v658_v51  ;;  %v656_v60 = vsel %vm655_vm5, %v953_v44, %v652_v56 }
 0x284   : > { %v667_v62 = vmul.f32 %v656_v60, %v614_v50 }
 0x285   : > { %v660_v54 = vmul.f32 0.5, %v659_v53 }
 0x287   : > { %v661_v55 = vsub.f32 1.5, %v660_v54 }
 0x289   : > { %v662_v57 = vmul.f32 %v955_v49, %v661_v55 }
 0x28b   : > { %v666_v59 = vsel %vm665_vm7, %v955_v49, %v662_v57 }
 0x28c   : > { %v668_v61 = vmul.f32 %v666_v59, %v617_v58 }
 0x28e   : > { %684 = vmatpush.msra.mxu0 %v668_v61 }
 0x290   : > { %685 = vmatpush.msra.mxu0 %v667_v62 }
 0x291   : > { %847 = vmatmul.msk.f32.vlgmr.msra.gmra.mxu0 %vm373_vm1, %v1091_v3 }
 0x30e   : > { %v687_v0 = vpop.f32.mrf.mxu0 }
 0x30f   : > { %v690_v1 = vadd.f32 %v687_v0, %v669_v63 }
 0x311   : > { %692 = vst.msk [vmem:[%s1224_s25] sm:$0x1] %vm691_vm8, %v690_v1 }
 0x312 PF: > { %s20_s19 = sadd.s32 1, %s1086_s19   ;;  %s1402_s22 = sld [smem:[#allocation8_spill]] }
 0x313   : > { %p17_p4 = scmp.ge.s32.totalorder %s20_s19, 6   ;;  %s1403_s29 = sld [smem:[#allocation9_spill]] }
 0x314   : > { %s1404_s12 = smov %s1062_s13  ;;  %s1405_s13 = smov %s1066_s14 }
 0x315   : > { %s1406_s14 = smov %s1189_s10  ;;  %s1407_s15 = smov %s1078_s17 }
 0x316   : > { %s1408_s16 = smov %s1082_s18  ;;  %19 = sbr.rel (!%p17_p4) target bundleno = 9 (0x9), region = 97 }
 0x318   : > { %s1409_s17 = smov %s1402_s22 }
 0x319   : > { %s1410_s18 = smov %s1403_s29 }
 0x31b   :  { %724 = vsyncpa [#allocation3], 1 }
 0x31c   :  { %726 = vsyncpa [#allocation3 + $0x1], 1 }
 0x31d   :  { %727 = vsyncpa [#allocation5], 1 }
 0x31e   :  { %729 = vsyncpa [#allocation5 + $0x1], 1 }

</bundles_post_ra>
